<compile_context>
chip_gen: v5e
topology: v5e:2x2
jax: 0.10.0
libtpu: 0.0.40
codegen_flags: <defaults>
</compile_context>

<pallas_src>
import functools

import jax
import jax.numpy as jnp
from jax.experimental import pallas as pl
from jax.experimental.pallas import tpu as pltpu


def _round_up(x, m):
    return ((x + m - 1) // m) * m


# ----------------------------------------------------------------------------
# Pallas kernel: one (batch, pixel-tile) step of  sigmoid(conv3x3(x) + b)
# ----------------------------------------------------------------------------
def _outconv_kernel(wp, act, x_ref, xh_ref, w_ref, b_ref, out_ref):
    # x_ref  : (1, Cin, TILE)     bf16, current tile of the flat padded image
    # xh_ref : (1, Cin, HALO)     bf16, right halo (first HALO lanes of next tile)
    # w_ref  : (9, Cout_p, Cin)   bf16, tap index t = dy*3 + dx
    # b_ref  : (Cout_p, 1)        f32
    # out_ref: (1, Cout_p, TILE)  bf16 (act=True) or f32
    tile = out_ref.shape[2]
    cout_p = out_ref.shape[1]

    # Window = current tile + right halo; every tap is a lane slice of it.
    xwin = jnp.concatenate([x_ref[0], xh_ref[0]], axis=1)   # (Cin, TILE+HALO)
    w = w_ref[...]                                           # (9, Cout_p, Cin)

    acc = jnp.zeros((cout_p, tile), jnp.float32)
    for t in range(9):
        dy, dx = divmod(t, 3)
        off = dy * wp + dx                                   # static lane offset
        tap = xwin[:, off:off + tile]                        # (Cin, TILE) bf16
        acc = acc + jnp.dot(w[t], tap, preferred_element_type=jnp.float32)

    acc = acc + b_ref[...]                                   # (Cout_p, TILE)
    if act:
        acc = jax.nn.sigmoid(acc)                            # EUP
    out_ref[0] = acc.astype(out_ref.dtype)


# ----------------------------------------------------------------------------
# Wrapper
# ----------------------------------------------------------------------------
def outconv_pallas(x_nchw, weight, bias, act=True, tile_target=4096):
    """sigmoid(conv2d(x, weight, bias, kernel=3, padding=1)), NCHW in / out.

    x_nchw: (N, Cin, H, W); weight: (Cout, Cin, 3, 3) OIHW; bias: (Cout,).
    """
    n, cin, h, w = x_nchw.shape
    cout = weight.shape[0]
    cout_p = _round_up(cout, 8)               # sublane padding only (was 128)
    hp, wp = h + 2, w + 2

    # Flattened-padded-image trick: output pixel (r, c) lives at flat index
    # q = r*wp + c and tap (dy, dx) reads flat index q + dy*wp + dx, so every
    # tap is a contiguous lane window.  Columns c in {w, w+1} of each row are
    # junk and are sliced off in the epilogue.
    lout = h * wp                             # flat output length (junk cols incl.)
    halo = 2 * wp + 2                         # extra lanes needed past a tile
    halo_blk = _round_up(halo, 128)           # halo view width (lane aligned)

    # Pixel-tile: big enough to amortise per-step overhead, and a multiple of
    # halo_blk so the halo view's block index is exact.
    tile = _round_up(min(tile_target, _round_up(lout, 128)), halo_blk)
    if n * ((lout + tile - 1) // tile) < 2 and tile > halo_blk:
        tile = _round_up(max((lout + 1) // 2, 1), halo_blk)  # >=2 steps (v7x megacore)
    n_tiles = (lout + tile - 1) // tile
    lout_pad = n_tiles * tile
    lin_pad = (n_tiles + 1) * tile            # spare tile keeps halo view in-bounds

    # ---- operand prep (cheap XLA: NCHW is already channel-major, no transpose) ----
    xflat = jnp.pad(x_nchw.astype(jnp.bfloat16), ((0, 0), (0, 0), (1, 1), (1, 1)))
    xflat = xflat.reshape(n, cin, hp * wp)
    xflat = jnp.pad(xflat, ((0, 0), (0, 0), (0, lin_pad - hp * wp)))

    # OIHW -> (tap, Cout_p, Cin), tap = dy*3 + dx; bf16 MXU operand.
    wt = jnp.transpose(weight, (2, 3, 0, 1)).reshape(9, cout, cin)
    wt = jnp.pad(wt, ((0, 0), (0, cout_p - cout), (0, 0))).astype(jnp.bfloat16)
    bt = jnp.pad(bias.astype(jnp.float32), (0, cout_p - cout)).reshape(cout_p, 1)

    out_dtype = jnp.bfloat16 if act else jnp.float32
    out_bpe = 2 if act else 4

    kernel = functools.partial(_outconv_kernel, wp, act)
    halo_ratio = tile // halo_blk

    # VMEM budget: real block footprints (incl. sublane/lane padding), x2 buffers.
    block_bytes = (_round_up(cin, 16) * tile * 2            # x tile (bf16)
                   + _round_up(cin, 16) * halo_blk * 2      # halo (bf16)
                   + 9 * _round_up(cout_p, 16) * 128 * 2    # weights
                   + _round_up(cout_p, 8) * 128 * 4         # bias
                   + _round_up(cout_p, 16) * tile * out_bpe)
    vmem_limit = int(min(max(2 * block_bytes + (8 << 20), 32 << 20), 48 << 20))

    flops = 2 * n * lout_pad * 9 * cin * cout_p
    bytes_accessed = (n * cin * (lin_pad + n_tiles * halo_blk) * 2
                      + 9 * cout_p * cin * 2 + cout_p * 4
                      + n * cout_p * lout_pad * out_bpe)

    out = pl.pallas_call(
        kernel,
        out_shape=jax.ShapeDtypeStruct((n, cout_p, lout_pad), out_dtype),
        grid=(n, n_tiles),
        in_specs=[
            pl.BlockSpec((1, cin, tile), lambda b, t: (b, 0, t)),
            pl.BlockSpec((1, cin, halo_blk),
                         lambda b, t: (b, 0, (t + 1) * halo_ratio)),
            pl.BlockSpec((9, cout_p, cin), lambda b, t: (0, 0, 0)),
            pl.BlockSpec((cout_p, 1), lambda b, t: (0, 0)),
        ],
        out_specs=pl.BlockSpec((1, cout_p, tile), lambda b, t: (b, 0, t)),
        compiler_params=pltpu.CompilerParams(
            dimension_semantics=("parallel", "parallel"),
            vmem_limit_bytes=vmem_limit),
        cost_estimate=pl.CostEstimate(
            flops=flops,
            transcendentals=n * lout_pad * cout_p if act else 0,
            bytes_accessed=bytes_accessed),
    )(xflat, xflat, wt, bt)

    # Drop channel padding, pixel-tile padding and the two junk columns per row.
    out = out[:, :cout, :lout].reshape(n, cout, h, wp)[..., :w]
    return out.astype(jnp.float32)


# ----------------------------------------------------------------------------
# Pure-JAX reference (correctness check)
# ----------------------------------------------------------------------------
def outconv_reference(x_nchw, weight, bias, act=True):
    y = jax.lax.conv_general_dilated(
        x_nchw, weight, (1, 1), 'SAME',
        dimension_numbers=('NCHW', 'OIHW', 'NCHW'))
    y = y + bias.reshape(1, -1, 1, 1)
    return jax.nn.sigmoid(y) if act else y


# ----------------------------------------------------------------------------
if __name__ == "__main__":
    key = jax.random.PRNGKey(0)
    kx, kw, kb = jax.random.split(key, 3)

    N, Cin, H, W = 2, 4, 16, 16
    Cout = 3                                   # typical OutConv (e.g. RGB)

    x = jax.random.normal(kx, (N, Cin, H, W), dtype=jnp.float32)
    weight = (0.1 * jax.random.normal(kw, (Cout, Cin, 3, 3))).astype(jnp.float32)
    bias = (0.1 * jax.random.normal(kb, (Cout,))).astype(jnp.float32)

    out = jax.block_until_ready(outconv_pallas(x, weight, bias, act=True))
    ref = outconv_reference(x, weight, bias, act=True)

    assert out.shape == ref.shape == (N, Cout, H, W)
    max_err = float(jnp.max(jnp.abs(out - ref)))
    # Tolerance covers bf16 MXU operands + bf16 output storage (f32 accumulate).
    assert max_err < 2e-2, max_err

    print("KERNEL_OK")
</pallas_src>

<mosaic_0001>
module attributes {stable_mosaic.version = 11 : i64} {
  func.func @_outconv_kernel(%arg0: i32, %arg1: i32, %arg2: memref<1x4x384xbf16, #tpu.memory_space<vmem>>, %arg3: memref<1x4x128xbf16, #tpu.memory_space<vmem>>, %arg4: memref<9x8x4xbf16, #tpu.memory_space<vmem>>, %arg5: memref<8x1xf32, #tpu.memory_space<vmem>>, %arg6: memref<1x8x384xbf16, #tpu.memory_space<vmem>>) attributes {dimension_semantics = [#tpu.dimension_semantics<parallel>, #tpu.dimension_semantics<parallel>], iteration_bounds = array<i64: 2, 1>, scalar_prefetch = 0 : i64, scratch_operands = 0 : i64, tpu.core_type = #tpu.core_type<tc>, window_params = [{transform_indices = @transform_0, window_bounds = array<i64: 1, 4, 384>}, {transform_indices = @transform_1, window_bounds = array<i64: 1, 4, 128>}, {pipeline_mode = #tpu.pipeline_mode<synchronous>, transform_indices = @transform_2, window_bounds = array<i64: 9, 8, 4>}, {pipeline_mode = #tpu.pipeline_mode<synchronous>, transform_indices = @transform_3, window_bounds = array<i64: 8, 1>}, {transform_indices = @transform_4, window_bounds = array<i64: 1, 8, 384>}]} {
    %c0 = arith.constant 0 : index
    %c0_0 = arith.constant 0 : index
    %c0_1 = arith.constant 0 : index
    %0 = vector.load %arg2[%c0, %c0_0, %c0_1] : memref<1x4x384xbf16, #tpu.memory_space<vmem>>, vector<1x4x384xbf16>
    %1 = vector.shape_cast %0 : vector<1x4x384xbf16> to vector<4x384xbf16>
    %c0_2 = arith.constant 0 : index
    %c0_3 = arith.constant 0 : index
    %c0_4 = arith.constant 0 : index
    %2 = vector.load %arg3[%c0_2, %c0_3, %c0_4] : memref<1x4x128xbf16, #tpu.memory_space<vmem>>, vector<1x4x128xbf16>
    %3 = vector.shape_cast %2 : vector<1x4x128xbf16> to vector<4x128xbf16>
    %4 = tpu.concatenate %1, %3 in 1 : vector<4x384xbf16>, vector<4x128xbf16> -> vector<4x512xbf16>
    %c0_5 = arith.constant 0 : index
    %c0_6 = arith.constant 0 : index
    %c0_7 = arith.constant 0 : index
    %5 = vector.load %arg4[%c0_5, %c0_6, %c0_7] : memref<9x8x4xbf16, #tpu.memory_space<vmem>>, vector<9x8x4xbf16>
    %cst = arith.constant 0.000000e+00 : f32
    %6 = vector.broadcast %cst : f32 to vector<8x384xf32>
    %7 = vector.extract_strided_slice %4 {offsets = [0, 0], sizes = [4, 384], strides = [1, 1]} : vector<4x512xbf16> to vector<4x384xbf16>
    %8 = vector.extract_strided_slice %5 {offsets = [0, 0, 0], sizes = [1, 8, 4], strides = [1, 1, 1]} : vector<9x8x4xbf16> to vector<1x8x4xbf16>
    %9 = vector.shape_cast %8 : vector<1x8x4xbf16> to vector<8x4xbf16>
    %cst_8 = arith.constant dense<0.000000e+00> : vector<8x384xf32>
    %10 = tpu.matmul %9, %7, %cst_8 {dimension_numbers = #tpu.dot_dimension_numbers<[1], [0], [0], [1], [0, 0, 1, 1], [], []>} : vector<8x4xbf16>, vector<4x384xbf16>, vector<8x384xf32> -> vector<8x384xf32>
    %11 = arith.addf %6, %10 : vector<8x384xf32>
    %12 = vector.extract_strided_slice %4 {offsets = [0, 1], sizes = [4, 384], strides = [1, 1]} : vector<4x512xbf16> to vector<4x384xbf16>
    %13 = vector.extract_strided_slice %5 {offsets = [1, 0, 0], sizes = [1, 8, 4], strides = [1, 1, 1]} : vector<9x8x4xbf16> to vector<1x8x4xbf16>
    %14 = vector.shape_cast %13 : vector<1x8x4xbf16> to vector<8x4xbf16>
    %cst_9 = arith.constant dense<0.000000e+00> : vector<8x384xf32>
    %15 = tpu.matmul %14, %12, %cst_9 {dimension_numbers = #tpu.dot_dimension_numbers<[1], [0], [0], [1], [0, 0, 1, 1], [], []>} : vector<8x4xbf16>, vector<4x384xbf16>, vector<8x384xf32> -> vector<8x384xf32>
    %16 = arith.addf %11, %15 : vector<8x384xf32>
    %17 = vector.extract_strided_slice %4 {offsets = [0, 2], sizes = [4, 384], strides = [1, 1]} : vector<4x512xbf16> to vector<4x384xbf16>
    %18 = vector.extract_strided_slice %5 {offsets = [2, 0, 0], sizes = [1, 8, 4], strides = [1, 1, 1]} : vector<9x8x4xbf16> to vector<1x8x4xbf16>
    %19 = vector.shape_cast %18 : vector<1x8x4xbf16> to vector<8x4xbf16>
    %cst_10 = arith.constant dense<0.000000e+00> : vector<8x384xf32>
    %20 = tpu.matmul %19, %17, %cst_10 {dimension_numbers = #tpu.dot_dimension_numbers<[1], [0], [0], [1], [0, 0, 1, 1], [], []>} : vector<8x4xbf16>, vector<4x384xbf16>, vector<8x384xf32> -> vector<8x384xf32>
    %21 = arith.addf %16, %20 : vector<8x384xf32>
    %22 = vector.extract_strided_slice %4 {offsets = [0, 18], sizes = [4, 384], strides = [1, 1]} : vector<4x512xbf16> to vector<4x384xbf16>
    %23 = vector.extract_strided_slice %5 {offsets = [3, 0, 0], sizes = [1, 8, 4], strides = [1, 1, 1]} : vector<9x8x4xbf16> to vector<1x8x4xbf16>
    %24 = vector.shape_cast %23 : vector<1x8x4xbf16> to vector<8x4xbf16>
    %cst_11 = arith.constant dense<0.000000e+00> : vector<8x384xf32>
    %25 = tpu.matmul %24, %22, %cst_11 {dimension_numbers = #tpu.dot_dimension_numbers<[1], [0], [0], [1], [0, 0, 1, 1], [], []>} : vector<8x4xbf16>, vector<4x384xbf16>, vector<8x384xf32> -> vector<8x384xf32>
    %26 = arith.addf %21, %25 : vector<8x384xf32>
    %27 = vector.extract_strided_slice %4 {offsets = [0, 19], sizes = [4, 384], strides = [1, 1]} : vector<4x512xbf16> to vector<4x384xbf16>
    %28 = vector.extract_strided_slice %5 {offsets = [4, 0, 0], sizes = [1, 8, 4], strides = [1, 1, 1]} : vector<9x8x4xbf16> to vector<1x8x4xbf16>
    %29 = vector.shape_cast %28 : vector<1x8x4xbf16> to vector<8x4xbf16>
    %cst_12 = arith.constant dense<0.000000e+00> : vector<8x384xf32>
    %30 = tpu.matmul %29, %27, %cst_12 {dimension_numbers = #tpu.dot_dimension_numbers<[1], [0], [0], [1], [0, 0, 1, 1], [], []>} : vector<8x4xbf16>, vector<4x384xbf16>, vector<8x384xf32> -> vector<8x384xf32>
    %31 = arith.addf %26, %30 : vector<8x384xf32>
    %32 = vector.extract_strided_slice %4 {offsets = [0, 20], sizes = [4, 384], strides = [1, 1]} : vector<4x512xbf16> to vector<4x384xbf16>
    %33 = vector.extract_strided_slice %5 {offsets = [5, 0, 0], sizes = [1, 8, 4], strides = [1, 1, 1]} : vector<9x8x4xbf16> to vector<1x8x4xbf16>
    %34 = vector.shape_cast %33 : vector<1x8x4xbf16> to vector<8x4xbf16>
    %cst_13 = arith.constant dense<0.000000e+00> : vector<8x384xf32>
    %35 = tpu.matmul %34, %32, %cst_13 {dimension_numbers = #tpu.dot_dimension_numbers<[1], [0], [0], [1], [0, 0, 1, 1], [], []>} : vector<8x4xbf16>, vector<4x384xbf16>, vector<8x384xf32> -> vector<8x384xf32>
    %36 = arith.addf %31, %35 : vector<8x384xf32>
    %37 = vector.extract_strided_slice %4 {offsets = [0, 36], sizes = [4, 384], strides = [1, 1]} : vector<4x512xbf16> to vector<4x384xbf16>
    %38 = vector.extract_strided_slice %5 {offsets = [6, 0, 0], sizes = [1, 8, 4], strides = [1, 1, 1]} : vector<9x8x4xbf16> to vector<1x8x4xbf16>
    %39 = vector.shape_cast %38 : vector<1x8x4xbf16> to vector<8x4xbf16>
    %cst_14 = arith.constant dense<0.000000e+00> : vector<8x384xf32>
    %40 = tpu.matmul %39, %37, %cst_14 {dimension_numbers = #tpu.dot_dimension_numbers<[1], [0], [0], [1], [0, 0, 1, 1], [], []>} : vector<8x4xbf16>, vector<4x384xbf16>, vector<8x384xf32> -> vector<8x384xf32>
    %41 = arith.addf %36, %40 : vector<8x384xf32>
    %42 = vector.extract_strided_slice %4 {offsets = [0, 37], sizes = [4, 384], strides = [1, 1]} : vector<4x512xbf16> to vector<4x384xbf16>
    %43 = vector.extract_strided_slice %5 {offsets = [7, 0, 0], sizes = [1, 8, 4], strides = [1, 1, 1]} : vector<9x8x4xbf16> to vector<1x8x4xbf16>
    %44 = vector.shape_cast %43 : vector<1x8x4xbf16> to vector<8x4xbf16>
    %cst_15 = arith.constant dense<0.000000e+00> : vector<8x384xf32>
    %45 = tpu.matmul %44, %42, %cst_15 {dimension_numbers = #tpu.dot_dimension_numbers<[1], [0], [0], [1], [0, 0, 1, 1], [], []>} : vector<8x4xbf16>, vector<4x384xbf16>, vector<8x384xf32> -> vector<8x384xf32>
    %46 = arith.addf %41, %45 : vector<8x384xf32>
    %47 = vector.extract_strided_slice %4 {offsets = [0, 38], sizes = [4, 384], strides = [1, 1]} : vector<4x512xbf16> to vector<4x384xbf16>
    %48 = vector.extract_strided_slice %5 {offsets = [8, 0, 0], sizes = [1, 8, 4], strides = [1, 1, 1]} : vector<9x8x4xbf16> to vector<1x8x4xbf16>
    %49 = vector.shape_cast %48 : vector<1x8x4xbf16> to vector<8x4xbf16>
    %cst_16 = arith.constant dense<0.000000e+00> : vector<8x384xf32>
    %50 = tpu.matmul %49, %47, %cst_16 {dimension_numbers = #tpu.dot_dimension_numbers<[1], [0], [0], [1], [0, 0, 1, 1], [], []>} : vector<8x4xbf16>, vector<4x384xbf16>, vector<8x384xf32> -> vector<8x384xf32>
    %51 = arith.addf %46, %50 : vector<8x384xf32>
    %c0_17 = arith.constant 0 : index
    %c0_18 = arith.constant 0 : index
    %52 = vector.load %arg5[%c0_17, %c0_18] : memref<8x1xf32, #tpu.memory_space<vmem>>, vector<8x1xf32>
    %53 = vector.broadcast %52 : vector<8x1xf32> to vector<8x384xf32>
    %54 = arith.addf %51, %53 : vector<8x384xf32>
    %55 = arith.negf %54 : vector<8x384xf32>
    %56 = math.exp %55 : vector<8x384xf32>
    %cst_19 = arith.constant 1.000000e+00 : f32
    %57 = vector.broadcast %cst_19 : f32 to vector<8x384xf32>
    %58 = arith.addf %57, %56 : vector<8x384xf32>
    %59 = arith.divf %57, %58 : vector<8x384xf32>
    %60 = arith.truncf %59 : vector<8x384xf32> to vector<8x384xbf16>
    %c0_20 = arith.constant 0 : index
    %c0_21 = arith.constant 0 : index
    %c0_22 = arith.constant 0 : index
    %61 = vector.load %arg6[%c0_20, %c0_21, %c0_22] : memref<1x8x384xbf16, #tpu.memory_space<vmem>>, vector<1x8x384xbf16>
    %62 = vector.shape_cast %61 : vector<1x8x384xbf16> to vector<8x384xbf16>
    %63 = vector.shape_cast %60 : vector<8x384xbf16> to vector<1x8x384xbf16>
    tpu.vector_store %arg6[%c0_20, %c0_21, %c0_22], %63 {strides = array<i32>} : memref<1x8x384xbf16, #tpu.memory_space<vmem>>, vector<1x8x384xbf16>,
    return
  }
  func.func @transform_0(%arg0: i32, %arg1: i32) -> (i32, i32, i32) {
    %c0_i32 = arith.constant 0 : i32
    %c0_i32_0 = arith.constant 0 : i32
    return %arg0, %c0_i32, %arg1 : i32, i32, i32
  }
  func.func @transform_1(%arg0: i32, %arg1: i32) -> (i32, i32, i32) {
    %c1_i32 = arith.constant 1 : i32
    %0 = arith.addi %arg1, %c1_i32 : i32
    %c3_i32 = arith.constant 3 : i32
    %1 = arith.muli %0, %c3_i32 : i32
    %c0_i32 = arith.constant 0 : i32
    %c0_i32_0 = arith.constant 0 : i32
    return %arg0, %c0_i32, %1 : i32, i32, i32
  }
  func.func @transform_2(%arg0: i32, %arg1: i32) -> (i32, i32, i32) {
    %c0_i32 = arith.constant 0 : i32
    %c0_i32_0 = arith.constant 0 : i32
    %c0_i32_1 = arith.constant 0 : i32
    %c0_i32_2 = arith.constant 0 : i32
    return %c0_i32, %c0_i32_0, %c0_i32_1 : i32, i32, i32
  }
  func.func @transform_3(%arg0: i32, %arg1: i32) -> (i32, i32) {
    %c0_i32 = arith.constant 0 : i32
    %c0_i32_0 = arith.constant 0 : i32
    %c0_i32_1 = arith.constant 0 : i32
    return %c0_i32, %c0_i32_0 : i32, i32
  }
  func.func @transform_4(%arg0: i32, %arg1: i32) -> (i32, i32, i32) {
    %c0_i32 = arith.constant 0 : i32
    %c0_i32_0 = arith.constant 0 : i32
    return %arg0, %c0_i32, %arg1 : i32, i32, i32
  }
}

</mosaic_0001>

<bundles_post_ra>
// kernel: tpu_custom_call.1
= control target key start
LH: loop header
LB: loop body
LE: loop exit
PB: predicated region body
PF: predicated region fallthrough
CT: control target
= control target key end

     0   :  { %9 = vsyncpa [#allocation3], 0  ;;  %s1507_s0 = inlined_call_operand.vmem [shape: bf16[2,4,768], index: 0, kind: input, shape index: {}]   ;;  %s1508_s1 = inlined_call_operand.vmem [shape: bf16[2,4,768], index: 1, kind: input, shape index: {}]   ;;  %s1509_s2 = inlined_call_operand.vmem [shape: bf16[9,8,4], index: 2, kind: input, shape index: {}]   ;;  %s1510_s3 = inlined_call_operand.vmem [shape: f32[8,1], index: 3, kind: input, shape index: {}]   ;;  %s1511_s4 = inlined_call_operand.hbm [shape: bf16[2,8,384], index: 4, kind: output, shape index: {}]  }
   0x1   :  { %11 = vsyncpa [#allocation3 + $0x1], 0  ;;  %s1290_s15 = smov 0   ;;  %s1292_s16 = smov 0  }
   0x2   :  { %s1294_s17 = smov 0   ;;  %s1296_s18 = smov 0  }
   0x3   :  { %s1298_s19 = smov 0   ;;  %s1300_s20 = smov 0  }
   0x4 LB: > { %s1051_s21 = sadd.s32 4294967295, %s1254_s20   ;;  %s1052_s22 = sadd.s32 4294967294, %s1254_s20   ;;  %s1254_s20 = sphi %s1300_s20, %s17_s20   ;;  %s1250_s19 = sphi %s1298_s19, %s1518_s19   ;;  %s1246_s18 = sphi %s1296_s18, %s1517_s18   ;;  %s1242_s17 = sphi %s1294_s17, %s1516_s17   ;;  %s1238_s16 = sphi %s1292_s16, %s1515_s16   ;;  %s1234_s15 = sphi %s1290_s15, %s1514_s15  }
   0x5   : > { %s29_s23 = sadd.s32 1, %s1250_s19  ;;  %s140_s24 = sadd.s32 1, %s1242_s17 }
   0x6   : > { %p31_p0 = scmp.ge.s32.totalorder %s29_s23, 2  ;;  %p150_p1 = scmp.ne.s32.totalorder %s1242_s17, %s1238_s16 }
   0x7   : > { %p151_p2 = scmp.eq.s32.totalorder %s1051_s21, 1  ;;  %p156_p3 = scmp.ne.s32.totalorder %s1238_s16, %s1234_s15 }
   0x8   : > { %s1520_s23 = smov (%p31_p0, %s29_s23), 0  ;;  %p157_p5 = scmp.eq.s32.totalorder %s1052_s22, 1 }
   0x9   : > { %p1330_p4 = por %p151_p2, %p150_p1  ;;  %s135_s26 = ssub.s32 %s1250_s19, %s1520_s23 }
   0xa   : > { %p1055_p6 = scmp.ge.s32.totalorder %s1254_s20, 1  ;;  %p138_p7 = scmp.eq.s32.totalorder %s135_s26, 0 }
   0xb   : > { %p1337_p8 = por %p157_p5, %p156_p3  ;;  %p209_p9 = scmp.lt.s32.totalorder %s1254_s20, 3 }
   0xc   : > { %s1343_s28 = scalar_select %p138_p7, %s1242_s17, %s140_s24  }
   0xd   : > { %p210_p10 = pnand %p1055_p6, %p209_p9 }
   0xe   : > { %p250_p11 = scmp.lt.s32.totalorder (!%p210_p10), %s1246_s18, 1  ;;  %s1256_s9 = smov (!%p210_p10), 127  }
   0xf   : > { %213 = sbr.rel (%p210_p10) target bundleno = 430 (0x1ae), region = 36  ;;  %s1257_s10 = smov (!%p210_p10), 126  }
  0x10   : > { %s1258_s14 = smov (!%p210_p10), 110   ;;  %s1259_s21 = smov (!%p210_p10), 109  }
  0x11   : > { %s1260_s22 = smov (!%p210_p10), 108   ;;  %s1261_s24 = smov (!%p210_p10), 92  }
  0x12   : > { %s1262_s26 = smov (!%p210_p10), 91   ;;  %s1196_s5 = scalar_lea.hbm (!%p210_p10), %s1511_s4, 24 }
  0x14   : > { %s251_s29 = scalar_select %p250_p11, %s1246_s18, 1  ;;  %vm309_vm0 = vcmask 1041408   ;;  %v283_v6 = vld [vmem:[%s1509_s2] sm:$0xf]  ;;  %vm305_vm1 = vcmask 31744   ;;  %vm414_vm2 = vcmask 1031168  }
  0x15   : > { %vm301_vm3 = vcmask 1039360   ;;  %v284_v25 = vld [vmem:[%s1509_s2 + $0x4] sm:$0xf]  ;;  %vm480_vm4 = vcmask 900096   ;;  %v285_v35 = vld [vmem:[%s1509_s2 + $0x8] sm:$0xf] }
  0x16   : > { %s1094_s30 = smul.u32 12, %s251_s29  ;;  %s1263_s29 = smov 90   ;;  %vm546_vm5 = vcmask 891904   ;;  %v286_v48 = vld [vmem:[%s1509_s2 + $0xc] sm:$0xf]  ;;  %vm612_vm6 = vcmask 883712  }
  0x17   : > { %vm678_vm7 = vcmask 752640   ;;  %vm744_vm8 = vcmask 744448   ;;  %vm810_vm9 = vcmask 736256  }
  0x18   : > { %s257_s7 = scalar_lea.vmem %s1507_s0, %s1094_s30  ;;  %s1092_s8 = sadd.s32 6, %s1094_s30 }
  0x19   : > { %v273_v0 = vld [vmem:[%s257_s7] sm:$0x3f]  ;;  %s268_s13 = scalar_lea.vmem %s1508_s1, %s1092_s8  ;;  %s246_s8 = sand.u32 1, %s1238_s16  }
  0x1a   : > { %276 = vst [vmem:[#allocation1] ss:$4 sm:$0xff] %v273_v0  ;;  %v274_v3 = vld [vmem:[%s268_s13] sm:$0x3]  ;;  %v288_v0 = vld [vmem:[%s1509_s2 + $0x14] sm:$0xf] }
  0x21   : > { %v1350_v1 = vld.sshfl [vmem:[#allocation1 + $0x10] sm:$0xff pattern:$0x73625140]  ;;  %v277_v2 = vld.sshfl [vmem:[#allocation1] sm:$0xff pattern:$0x73625140] }
  0x22   : > { %297 = vrot.lane.b32.xlu0 %v1350_v1, %s1256_s9  ;;  %293 = vrot.lane.b32.xlu1 %v277_v2, %s1256_s9  ;;  %v279_v4 = vld.sshfl [vmem:[#allocation1 + $0x8] sm:$0xff pattern:$0x73625140]  ;;  %v361_v5 = vsel %vm309_vm0, %v277_v2, 0  ;;  %v365_v24 = vsel %vm309_vm0, %v1350_v1, 0 }
  0x23   : > { %406 = vrot.lane.b32.xlu2 %v277_v2, %s1257_s10  ;;  %374 = vmatpush.bf16.msra.mxu3 %v361_v5  ;;  %v363_v20 = vsel %vm309_vm0, %v279_v4, 0 }
  0x26   : > { %1061 = vmatmul.msk.bf16.vlgmr.msra.gmra.mxu3 %vm305_vm1, %v283_v6 }
  0x2a   : > { %299 = vrot.lane.b32.xlu0 %v274_v3, %s1256_s9  ;;  %295 = vrot.lane.b32.xlu1 %v279_v4, %s1256_s9  ;;  %s1093_s9 = smul.u32 12, %s246_s8 }
  0x2b   : > { %408 = vrot.lane.b32.xlu2 %v279_v4, %s1257_s10 }
  0x32   : > { %410 = vrot.lane.b32.xlu0 %v1350_v1, %s1257_s10  ;;  %474 = vrot.lane.b32.xlu1 %v279_v4, %s1258_s14 }
  0x33   : > { %476 = vrot.lane.b32.xlu2 %v1350_v1, %s1258_s14 }
  0x3a   : > { %412 = vrot.lane.b32.xlu0 %v274_v3, %s1257_s10  ;;  %472 = vrot.lane.b32.xlu1 %v277_v2, %s1258_s14  ;;  %s1096_s10 = smul.u32 12, %s1246_s18  ;;  %s248_s18 = scalar_lea.vmem [#allocation2], %s1093_s9 }
  0x3b   : > { %478 = vrot.lane.b32.xlu2 %v274_v3, %s1258_s14  ;;  %s954_s14 = sshll.u32 %s248_s18, 4  ;;  %s955_s14 = int_to_ptr.vmem [resolvable:$true] %s954_s14 }
  0x3c   : > { %s952_s13 = scalar_lea.hbm %s1511_s4, %s1096_s10 }
  0x42   : > { %542 = vrot.lane.b32.xlu0 %v1350_v1, %s1259_s21  ;;  %544 = vrot.lane.b32.xlu1 %v274_v3, %s1259_s21 }
  0x43   : > { %538 = vrot.lane.b32.xlu2 %v277_v2, %s1259_s21 }
  0x4a   : > { %540 = vrot.lane.b32.xlu0 %v279_v4, %s1259_s21  ;;  %604 = vrot.lane.b32.xlu1 %v277_v2, %s1260_s22  ;;  %s956_s21 = sshll.u32 %s952_s13, 4  ;;  %s957_s21 = int_to_ptr.hbm [resolvable:$true] %s956_s21 }
  0x4b   : > { %606 = vrot.lane.b32.xlu2 %v279_v4, %s1260_s22 }
  0x52   : > { %670 = vrot.lane.b32.xlu0 %v277_v2, %s1261_s24  ;;  %672 = vrot.lane.b32.xlu1 %v279_v4, %s1261_s24 }
  0x53   : > { %608 = vrot.lane.b32.xlu2 %v1350_v1, %s1260_s22 }
  0x5a   : > { %610 = vrot.lane.b32.xlu0 %v274_v3, %s1260_s22  ;;  %674 = vrot.lane.b32.xlu1 %v1350_v1, %s1261_s24  ;;  %s939_s22 = scalar_lea.sflag [#allocation3], %s246_s8 }
  0x5b   : > { %738 = vrot.lane.b32.xlu2 %v279_v4, %s1262_s26 }
  0x62   : > { %740 = vrot.lane.b32.xlu0 %v1350_v1, %s1262_s26  ;;  %676 = vrot.lane.b32.xlu1 %v274_v3, %s1261_s24  ;;  %s1190_s24 = sshra.s32 %s957_s21, 4  ;;  %s1191_s24 = int_to_ptr.hbm [resolvable:$true] %s1190_s24 }
  0x63   : > { %736 = vrot.lane.b32.xlu2 %v277_v2, %s1262_s26  ;;  %p1197_p1 = scmp.lt.s32.totalorder %s1191_s24, %s1511_s4 }
  0x6a   : > { %742 = vrot.lane.b32.xlu0 %v274_v3, %s1262_s26  ;;  %806 = vrot.lane.b32.xlu1 %v1350_v1, %s1263_s29  ;;  %s1192_s26 = scalar_lea.hbm %s1191_s24, 12 }
  0x6b   : > { %808 = vrot.lane.b32.xlu2 %v274_v3, %s1263_s29  ;;  %p1193_p12 = scmp.ne.s32.totalorder %s1191_s24, %s1192_s26  ;;  %p1198_p2 = scmp.lt.s32.totalorder %s1196_s5, %s1192_s26 }
  0x6d   : > { %p1194_p13 = pnand %p1193_p12, %p1330_p4  ;;  %p1199_p3 = por %p1198_p2, %p1197_p1 }
  0x6f   : > { %p1195_p0 = pneg %p1194_p13 }
  0x71   : > { %p1200_p5 = pnand %p1199_p3, %p1195_p0 }
  0x72   : > { %804 = vrot.lane.b32.xlu1 %v279_v4, %s1263_s29  ;;  %802 = vrot.lane.b32.xlu0 %v277_v2, %s1263_s29 }
  0x7d   : > { %v407_v7 = vpop.permute.xlu2 %406 }
  0x85   : > { %v409_v8 = vpop.permute.xlu2 %408 }
  0x86   : > { %v415_v12 = vsel %vm414_vm2, %v407_v7, %v409_v8 }
  0x87   : > { %v422_v16 = vsel %vm309_vm0, %v415_v12, 0 }
  0x8d   : > { %v477_v9 = vpop.permute.xlu2 %476 }
  0x94   : > { %v298_v10 = vpop.permute.xlu0 %297  ;;  %v294_v11 = vpop.permute.xlu1 %293 }
  0x95   : > { %v479_v13 = vpop.permute.xlu2 %478 }
  0x96   : > { %v483_v26 = vsel %vm480_vm4, %v477_v9, %v479_v13 }
  0x97   : > { %v494_v32 = vsel %vm309_vm0, %v483_v26, 0 }
  0x9c   : > { %v300_v14 = vpop.permute.xlu0 %299  ;;  %v296_v15 = vpop.permute.xlu1 %295 }
  0x9d   : > { %v302_v17 = vsel %vm301_vm3, %v294_v11, %v296_v15  ;;  %v303_v18 = vsel %vm301_vm3, %v296_v15, %v298_v10  ;;  %v304_v19 = vsel %vm301_vm3, %v298_v10, %v300_v14  ;;  %v539_v27 = vpop.permute.xlu2 %538 }
  0x9e   : > { %v311_v21 = vsel %vm309_vm0, %v302_v17, 0  ;;  %v314_v22 = vsel %vm309_vm0, %v303_v18, 0  ;;  %v317_v23 = vsel %vm309_vm0, %v304_v19, 0  ;;  %v289_v17 = vld [vmem:[%s1509_s2 + $0x18] sm:$0xf] }
  0x9f   : > { %326 = vmatpush.bf16.msra.mxu0 %v311_v21  ;;  %339 = vmatpush.bf16.msra.mxu1 %v314_v22 }
  0xa0   : > { %352 = vmatpush.bf16.msra.mxu2 %v317_v23 }
  0xa2   : > { %1058 = vmatmul.msk.bf16.vlgmr.msra.gmra.mxu0 %vm305_vm1, %v284_v25  ;;  %1059 = vmatmul.msk.bf16.vlgmr.msra.gmra.mxu1 %vm305_vm1, %v284_v25 }
  0xa3   : > { %387 = vmatpush.bf16.msrb.mxu0 %v363_v20  ;;  %400 = vmatpush.bf16.msrb.mxu1 %v365_v24 }
  0xa4   : > { %437 = vmatpush.bf16.msrb.mxu2 %v422_v16  ;;  %v411_v28 = vpop.permute.xlu0 %410  ;;  %v475_v29 = vpop.permute.xlu1 %474 }
  0xa5   : > { %1060 = vmatmul.msk.bf16.vlgmr.msra.gmra.mxu2 %vm305_vm1, %v284_v25  ;;  %v482_v30 = vsel %vm480_vm4, %v475_v29, %v477_v9  ;;  %v416_v31 = vsel %vm414_vm2, %v409_v8, %v411_v28  ;;  %v607_v42 = vpop.permute.xlu2 %606  ;;  %v287_v9 = vld [vmem:[%s1509_s2 + $0x10] sm:$0xf] }
  0xa6   : > { %v491_v33 = vsel %vm309_vm0, %v482_v30, 0  ;;  %v425_v34 = vsel %vm309_vm0, %v416_v31, 0  ;;  %v290_v31 = vld [vmem:[%s1509_s2 + $0x1c] sm:$0xf] }
  0xa7   : > { %450 = vmatpush.bf16.msrb.mxu3 %v425_v34  ;;  %v868_v34 = vld [vmem:[%s1510_s3] sm:$0xff] }
  0xa8   : > { %516 = vmatpush.bf16.msra.mxu2 %v491_v33 }
  0xa9   : > { %v376_v33 = vpop.f32.mrf.mxu3 }
  0xaa   : > { %1065 = vmatmul.msk.bf16.vlgmr.msrb.gmra.mxu3 %vm305_vm1, %v285_v35 }
  0xab   : > { %529 = vmatpush.bf16.msra.mxu3 %v494_v32  ;;  %v291_v32 = vld [vmem:[%s1509_s2 + $0x20] sm:$0xf] }
  0xac   : > { %v413_v36 = vpop.permute.xlu0 %412  ;;  %v473_v37 = vpop.permute.xlu1 %472 }
  0xad   : > { %v417_v38 = vsel %vm414_vm2, %v411_v28, %v413_v36  ;;  %v481_v39 = vsel %vm480_vm4, %v473_v37, %v475_v29  ;;  %v609_v47 = vpop.permute.xlu2 %608 }
  0xae   : > { %v428_v40 = vsel %vm309_vm0, %v417_v38, 0  ;;  %v488_v41 = vsel %vm309_vm0, %v481_v39, 0  ;;  %v614_v54 = vsel %vm612_vm6, %v607_v42, %v609_v47 }
  0xaf   : > { %463 = vmatpush.bf16.msra.mxu0 %v428_v40  ;;  %503 = vmatpush.bf16.msra.mxu1 %v488_v41  ;;  %v623_v58 = vsel %vm309_vm0, %v614_v54, 0 }
  0xb1   : > { %v378_v36 = vpop.f32.mrf.mxu3 }
  0xb2   : > { %1062 = vmatmul.msk.bf16.vlgmr.msrb.gmra.mxu0 %vm305_vm1, %v283_v6  ;;  %1063 = vmatmul.msk.bf16.vlgmr.msrb.gmra.mxu1 %vm305_vm1, %v283_v6 }
  0xb4   : > { %v543_v43 = vpop.permute.xlu0 %542  ;;  %v545_v44 = vpop.permute.xlu1 %544 }
  0xb5   : > { %1064 = vmatmul.msk.bf16.vlgmr.msrb.gmra.mxu2 %vm305_vm1, %v285_v35  ;;  %v549_v45 = vsel %vm546_vm5, %v543_v43, %v545_v44  ;;  %v739_v59 = vpop.permute.xlu2 %738 }
  0xb6   : > { %v560_v46 = vsel %vm309_vm0, %v549_v45, 0 }
  0xb7   : > { %595 = vmatpush.bf16.msrb.mxu2 %v560_v46 }
  0xba   : > { %1069 = vmatmul.msk.bf16.vlgmr.msra.gmra.mxu3 %vm305_vm1, %v286_v48 }
  0xbc   : > { %v541_v49 = vpop.permute.xlu0 %540  ;;  %v605_v50 = vpop.permute.xlu1 %604 }
  0xbd   : > { %v548_v51 = vsel %vm546_vm5, %v541_v49, %v543_v43  ;;  %v547_v52 = vsel %vm546_vm5, %v539_v27, %v541_v49  ;;  %v613_v53 = vsel %vm612_vm6, %v605_v50, %v607_v42  ;;  %v737_v1 = vpop.permute.xlu2 %736 }
  0xbe   : > { %v557_v55 = vsel %vm309_vm0, %v548_v51, 0  ;;  %v554_v56 = vsel %vm309_vm0, %v547_v52, 0  ;;  %v620_v57 = vsel %vm309_vm0, %v613_v53, 0  ;;  %v745_v6 = vsel %vm744_vm8, %v737_v1, %v739_v59 }
  0xbf   : > { %582 = vmatpush.bf16.msrb.mxu1 %v557_v55  ;;  %569 = vmatpush.bf16.msrb.mxu0 %v554_v56  ;;  %v752_v10 = vsel %vm309_vm0, %v745_v6, 0 }
  0xc0   : > { %635 = vmatpush.bf16.msrb.mxu3 %v620_v57 }
  0xc2   : > { %1066 = vmatmul.msk.bf16.vlgmr.msra.gmra.mxu0 %vm305_vm1, %v285_v35  ;;  %1067 = vmatmul.msk.bf16.vlgmr.msra.gmra.mxu1 %vm305_vm1, %v286_v48  ;;  %v1264_v35 = vmov 0  }
  0xc3   : > { %648 = vmatpush.bf16.msra.mxu0 %v623_v58  ;;  %1162 = vset.pattern.permute.xlu2 %v1264_v35 }
  0xc4   : > { %v671_v60 = vpop.permute.xlu0 %670  ;;  %v673_v61 = vpop.permute.xlu1 %672  ;;  %1163 = vset.pattern.permute.xlu0 %v1264_v35  ;;  %871 = vperm.xlu2 %1162, %v868_v34  }
  0xc5   : > { %1068 = vmatmul.msk.bf16.vlgmr.msra.gmra.mxu2 %vm305_vm1, %v286_v48  ;;  %v679_v62 = vsel %vm678_vm7, %v671_v60, %v673_v61  ;;  %v809_v18 = vpop.permute.xlu2 %808 }
  0xc6   : > { %v686_v63 = vsel %vm309_vm0, %v679_v62, 0 }
  0xc7   : > { %701 = vmatpush.bf16.msra.mxu2 %v686_v63 }
  0xca   : > { %1073 = vmatmul.msk.bf16.vlgmr.msrb.gmra.mxu3 %vm305_vm1, %v288_v0 }
  0xcc   : > { %v611_v2 = vpop.permute.xlu0 %610  ;;  %v675_v3 = vpop.permute.xlu1 %674 }
  0xcd   : > { %v615_v4 = vsel %vm612_vm6, %v609_v47, %v611_v2  ;;  %v680_v5 = vsel %vm678_vm7, %v673_v61, %v675_v3 }
  0xce   : > { %v626_v7 = vsel %vm309_vm0, %v615_v4, 0  ;;  %v689_v8 = vsel %vm309_vm0, %v680_v5, 0 }
  0xcf   : > { %714 = vmatpush.bf16.msra.mxu3 %v689_v8  ;;  %661 = vmatpush.bf16.msra.mxu1 %v626_v7 }
  0xd2   : > { %1070 = vmatmul.msk.bf16.vlgmr.msrb.gmra.mxu0 %vm305_vm1, %v287_v9  ;;  %1071 = vmatmul.msk.bf16.vlgmr.msrb.gmra.mxu1 %vm305_vm1, %v287_v9 }
  0xd3   : > { %767 = vmatpush.bf16.msrb.mxu1 %v752_v10 }
  0xd4   : > { %v741_v11 = vpop.permute.xlu0 %740  ;;  %v677_v12 = vpop.permute.xlu1 %676 }
  0xd5   : > { %1072 = vmatmul.msk.bf16.vlgmr.msrb.gmra.mxu2 %vm305_vm1, %v287_v9  ;;  %v746_v13 = vsel %vm744_vm8, %v739_v59, %v741_v11  ;;  %v681_v14 = vsel %vm678_vm7, %v675_v3, %v677_v12 }
  0xd6   : > { %v755_v15 = vsel %vm309_vm0, %v746_v13, 0  ;;  %v692_v16 = vsel %vm309_vm0, %v681_v14, 0 }
  0xd7   : > { %727 = vmatpush.bf16.msrb.mxu0 %v692_v16  ;;  %780 = vmatpush.bf16.msrb.mxu2 %v755_v15 }
  0xda   : > { %1077 = vmatmul.msk.bf16.vlgmr.msra.gmra.mxu3 %vm305_vm1, %v289_v17 }
  0xdc   : > { %v743_v19 = vpop.permute.xlu0 %742  ;;  %v807_v20 = vpop.permute.xlu1 %806 }
  0xdd   : > { %v747_v21 = vsel %vm744_vm8, %v741_v11, %v743_v19  ;;  %v813_v23 = vsel %vm810_vm9, %v807_v20, %v809_v18 }
  0xde   : > { %v758_v22 = vsel %vm309_vm0, %v747_v21, 0  ;;  %v824_v24 = vsel %vm309_vm0, %v813_v23, 0 }
  0xdf   : > { %793 = vmatpush.bf16.msrb.mxu3 %v758_v22 }
  0xe2   : > { %1074 = vmatmul.msk.bf16.vlgmr.msra.gmra.mxu0 %vm305_vm1, %v288_v0  ;;  %1075 = vmatmul.msk.bf16.vlgmr.msra.gmra.mxu1 %vm305_vm1, %v288_v0 }
  0xe4   : > { %v805_v25 = vpop.permute.xlu1 %804  ;;  %v803_v26 = vpop.permute.xlu0 %802 }
  0xe5   : > { %1076 = vmatmul.msk.bf16.vlgmr.msra.gmra.mxu2 %vm305_vm1, %v289_v17  ;;  %v812_v27 = vsel %vm810_vm9, %v805_v25, %v807_v20  ;;  %v811_v28 = vsel %vm810_vm9, %v803_v26, %v805_v25 }
  0xe6   : > { %859 = vmatpush.bf16.msra.mxu2 %v824_v24  ;;  %v821_v29 = vsel %vm309_vm0, %v812_v27, 0  ;;  %v818_v30 = vsel %vm309_vm0, %v811_v28, 0 }
  0xe7   : > { %846 = vmatpush.bf16.msra.mxu1 %v821_v29  ;;  %833 = vmatpush.bf16.msra.mxu0 %v818_v30 }
  0xea   : > { %1081 = vmatmul.msk.bf16.vlgmr.msrb.gmra.mxu3 %vm305_vm1, %v290_v31 }
  0xf2   : > { %1078 = vmatmul.msk.bf16.vlgmr.msrb.gmra.mxu0 %vm305_vm1, %v289_v17  ;;  %1079 = vmatmul.msk.bf16.vlgmr.msrb.gmra.mxu1 %vm305_vm1, %v290_v31 }
  0xf5   : > { %1080 = vmatmul.msk.bf16.vlgmr.msrb.gmra.mxu2 %vm305_vm1, %v290_v31 }
 0x102   : > { %1082 = vmatmul.msk.bf16.vlgmr.msra.gmra.mxu0 %vm305_vm1, %v291_v32  ;;  %1083 = vmatmul.msk.bf16.vlgmr.msra.gmra.mxu1 %vm305_vm1, %v291_v32 }
 0x105   : > { %1084 = vmatmul.msk.bf16.vlgmr.msra.gmra.mxu2 %vm305_vm1, %v291_v32 }
 0x11f   : > { %v328_v37 = vpop.f32.mrf.mxu0  ;;  %v341_v38 = vpop.f32.mrf.mxu1 }
 0x120   : > { %v377_v39 = vadd.f32 %v376_v33, %v328_v37  ;;  %v872_v37 = vpop.permute.xlu2 %871 }
 0x127   : > { %v330_v41 = vpop.f32.mrf.mxu0  ;;  %v343_v42 = vpop.f32.mrf.mxu1 }
 0x128   : > { %v354_v40 = vpop.f32.mrf.mxu2 }
 0x12d   : > { %v452_v43 = vpop.f32.mrf.mxu3 }
 0x12f   : > { %v389_v45 = vpop.f32.mrf.mxu0  ;;  %v402_v46 = vpop.f32.mrf.mxu1 }
 0x130   : > { %v356_v44 = vpop.f32.mrf.mxu2  ;;  %v390_v47 = vadd.f32 %v389_v45, %v341_v38  ;;  %v403_v48 = vadd.f32 %v402_v46, %v354_v40 }
 0x132   : > { %v470_v49 = vadd.f32 %v452_v43, %v390_v47 }
 0x135   : > { %v454_v50 = vpop.f32.mrf.mxu3 }
 0x137   : > { %v391_v52 = vpop.f32.mrf.mxu0  ;;  %v404_v53 = vpop.f32.mrf.mxu1 }
 0x138   : > { %v439_v51 = vpop.f32.mrf.mxu2 }
 0x139   : > { %v469_v18 = vadd.f32 %v439_v51, %v377_v39 }
 0x13d   : > { %v531_v54 = vpop.f32.mrf.mxu3 }
 0x13f   : > { %v465_v56 = vpop.f32.mrf.mxu0  ;;  %v505_v57 = vpop.f32.mrf.mxu1 }
 0x140   : > { %v441_v55 = vpop.f32.mrf.mxu2  ;;  %v535_v19 = vadd.f32 %v505_v57, %v469_v18  ;;  %v471_v25 = vadd.f32 %v465_v56, %v403_v48 }
 0x142   : > { %v537_v30 = vadd.f32 %v531_v54, %v471_v25 }
 0x145   : > { %v533_v58 = vpop.f32.mrf.mxu3 }
 0x147   : > { %v467_v60 = vpop.f32.mrf.mxu0  ;;  %v507_v61 = vpop.f32.mrf.mxu1 }
 0x148   : > { %v518_v59 = vpop.f32.mrf.mxu2 }
 0x149   : > { %v536_v20 = vadd.f32 %v518_v59, %v470_v49 }
 0x14d   : > { %v637_v62 = vpop.f32.mrf.mxu3 }
 0x14f   : > { %v571_v0 = vpop.f32.mrf.mxu0  ;;  %v584_v1 = vpop.f32.mrf.mxu1 }
 0x150   : > { %v520_v63 = vpop.f32.mrf.mxu2  ;;  %v601_v22 = vadd.f32 %v571_v0, %v535_v19  ;;  %v602_v23 = vadd.f32 %v584_v1, %v536_v20 }
 0x152   : > { %v667_v29 = vadd.f32 %v637_v62, %v601_v22 }
 0x155   : > { %v639_v2 = vpop.f32.mrf.mxu3 }
 0x157   : > { %v573_v4 = vpop.f32.mrf.mxu0  ;;  %v586_v5 = vpop.f32.mrf.mxu1 }
 0x158   : > { %v597_v3 = vpop.f32.mrf.mxu2 }
 0x159   : > { %v603_v33 = vadd.f32 %v597_v3, %v537_v30 }
 0x15d   : > { %v716_v6 = vpop.f32.mrf.mxu3 }
 0x15f   : > { %v650_v8 = vpop.f32.mrf.mxu0  ;;  %v663_v9 = vpop.f32.mrf.mxu1 }
 0x160   : > { %v599_v7 = vpop.f32.mrf.mxu2  ;;  %v668_v28 = vadd.f32 %v650_v8, %v602_v23  ;;  %v669_v38 = vadd.f32 %v663_v9, %v603_v33 }
 0x162   : > { %v734_v31 = vadd.f32 %v716_v6, %v668_v28 }
 0x165   : > { %v718_v10 = vpop.f32.mrf.mxu3 }
 0x167   : > { %v652_v12 = vpop.f32.mrf.mxu0  ;;  %v665_v13 = vpop.f32.mrf.mxu1 }
 0x168   : > { %v703_v11 = vpop.f32.mrf.mxu2 }
 0x169   : > { %v733_v32 = vadd.f32 %v703_v11, %v667_v29 }
 0x16d   : > { %v795_v14 = vpop.f32.mrf.mxu3 }
 0x16f   : > { %v729_v16 = vpop.f32.mrf.mxu0  ;;  %v769_v17 = vpop.f32.mrf.mxu1 }
 0x170   : > { %v705_v15 = vpop.f32.mrf.mxu2  ;;  %v799_v34 = vadd.f32 %v769_v17, %v733_v32  ;;  %v735_v43 = vadd.f32 %v729_v16, %v669_v38 }
 0x172   : > { %v801_v48 = vadd.f32 %v795_v14, %v735_v43 }
 0x175   : > { %v797_v21 = vpop.f32.mrf.mxu3 }
 0x177   : > { %v731_v26 = vpop.f32.mrf.mxu0  ;;  %v771_v27 = vpop.f32.mrf.mxu1 }
 0x178   : > { %v782_v24 = vpop.f32.mrf.mxu2 }
 0x179   : > { %v800_v35 = vadd.f32 %v782_v24, %v734_v31 }
 0x17f   : > { %v835_v39 = vpop.f32.mrf.mxu0  ;;  %v848_v40 = vpop.f32.mrf.mxu1 }
 0x180   : > { %v784_v36 = vpop.f32.mrf.mxu2  ;;  %v865_v41 = vadd.f32 %v835_v39, %v799_v34  ;;  %v866_v42 = vadd.f32 %v848_v40, %v800_v35 }
 0x182   : > { %v874_v44 = vadd.f32 %v872_v37, %v865_v41  ;;  %v875_v45 = vadd.f32 %v872_v37, %v866_v42 }
 0x184   : > { %v1085_v46 = vmul.f32 -1.442695, %v874_v44  ;;  %v1086_v47 = vmul.f32 -1.442695, %v875_v45 }
 0x186   : > { %1164 = vpow2.f32 %v1085_v46 }
 0x187   : > { %1166 = vpow2.f32 %v1086_v47  ;;  %v837_v51 = vpop.f32.mrf.mxu0  ;;  %v850_v52 = vpop.f32.mrf.mxu1 }
 0x188   : > { %v861_v49 = vpop.f32.mrf.mxu2 }
 0x189   : > { %v867_v50 = vadd.f32 %v861_v49, %v801_v48 }
 0x18b   : > { %v876_v53 = vadd.f32 %v872_v37, %v867_v50 }
 0x18c   : > { %v1165_v55 = vpop.eup %1164 }
 0x18d   : > { %v1087_v54 = vmul.f32 -1.442695, %v876_v53  ;;  %v1167_v56 = vpop.eup %1166  ;;  %v886_v57 = vadd.f32 1.0, %v1165_v55 }
 0x18e   : > { %v887_v58 = vadd.f32 1.0, %v1167_v56 }
 0x18f   : > { %1168 = vpow2.f32 %v1087_v54  ;;  %v900_v4 = vand.u32 2147483648, %v886_v57  ;;  %v898_v6 = vand.u32 2147483647, %v886_v57  ;;  %vm894_vm12 = vweird.f32 %v886_v57 }
 0x190   : > { %v863_v59 = vpop.f32.mrf.mxu2  ;;  %1170 = vrcp.f32 %v886_v57  ;;  %v915_v7 = vand.u32 2147483648, %v887_v58  ;;  %v913_v9 = vand.u32 2147483647, %v887_v58  ;;  %vm909_vm14 = vweird.f32 %v887_v58 }
 0x191   : > { %1172 = vrcp.f32 %v887_v58  ;;  %v901_v13 = vor.u32 1.1754944e-38, %v900_v4  ;;  %vm899_vm15 = vcmp.eq.f32.partialorder %v898_v6, 8.507059e+37 }
 0x192   : > { %v916_v16 = vor.u32 1.1754944e-38, %v915_v7  ;;  %vm914_vm1 = vcmp.eq.f32.partialorder %v913_v9, 8.507059e+37 }
 0x195   : > { %v1169_v60 = vpop.eup %1168 }
 0x196   : > { %v888_v61 = vadd.f32 1.0, %v1169_v60  ;;  %v1171_v62 = vpop.eup %1170 }
 0x197   : > { %v1173_v63 = vpop.eup %1172  ;;  %v890_v0 = vmul.f32 %v1171_v62, %v886_v57  ;;  %vm895_vm10 = vweird.f32 %v1171_v62 }
 0x198   : > { %1174 = vrcp.f32 %v888_v61  ;;  %v905_v1 = vmul.f32 %v1173_v63, %v887_v58  ;;  %vm910_vm11 = vweird.f32 %v1173_v63  ;;  %vm896_vm13 = vmor %vm894_vm12, %vm895_vm10  ;;  %v930_v21 = vand.u32 2147483648, %v888_v61 }
 0x199   : > { %v891_v2 = vsub.f32 1.0, %v890_v0  ;;  %vm911_vm0 = vmor %vm909_vm14, %vm910_vm11  ;;  %v928_v23 = vand.u32 2147483647, %v888_v61  ;;  %vm924_vm3 = vweird.f32 %v888_v61 }
 0x19a   : > { %v906_v3 = vsub.f32 1.0, %v905_v1  ;;  %v931_v26 = vor.u32 1.1754944e-38, %v930_v21 }
 0x19b   : > { %v892_v5 = vmul.f32 %v1171_v62, %v891_v2  ;;  %vm929_vm5 = vcmp.eq.f32.partialorder %v928_v23, 8.507059e+37 }
 0x19c   : > { %v907_v8 = vmul.f32 %v1173_v63, %v906_v3 }
 0x19d   : > { %v893_v11 = vadd.f32 %v1171_v62, %v892_v5 }
 0x19e   : > { %v1175_v10 = vpop.eup %1174  ;;  %v908_v14 = vadd.f32 %v1173_v63, %v907_v8 }
 0x19f   : > { %v920_v12 = vmul.f32 %v1175_v10, %v888_v61  ;;  %v897_v15 = vsel %vm896_vm13, %v1171_v62, %v893_v11  ;;  %vm925_vm2 = vweird.f32 %v1175_v10 }
 0x1a0   : > { %v902_v18 = vsel %vm899_vm15, %v901_v13, %v897_v15  ;;  %v912_v19 = vsel %vm911_vm0, %v1173_v63, %v908_v14  ;;  %vm926_vm4 = vmor %vm924_vm3, %vm925_vm2 }
 0x1a1   : > { %v921_v17 = vsub.f32 1.0, %v920_v12  ;;  %v917_v20 = vsel %vm914_vm1, %v916_v16, %v912_v19 }
 0x1a2   : > { %v934_v24 = vpack.c.bf16 %v917_v20, %v902_v18 }
 0x1a3   : > { %v922_v22 = vmul.f32 %v1175_v10, %v921_v17 }
 0x1a4   : > { %936 = vst [vmem:[%s248_s18] sm:$0xff] %v934_v24 }
 0x1a5   : > { %v923_v25 = vadd.f32 %v1175_v10, %v922_v22 }
 0x1a7   : > { %v927_v27 = vsel %vm926_vm4, %v1175_v10, %v923_v25 }
 0x1a8   : > { %v932_v28 = vsel %vm929_vm5, %v931_v26, %v927_v27 }
 0x1a9   : > { %v935_v29 = vpack.c.bf16 %v932_v28, %v932_v28 }
 0x1ab   : > { %937 = vst [vmem:[%s248_s18 + $0x8] sm:$0xf] %v935_v29 }
 0x1ac   : > { %1203 = shalt.err (!%p1200_p5)
}
 0x1ad   : > { %1097 = dma.vmem_to_hbm [thread:$0]  (%p1330_p4), %s955_s14, 192, %s957_s21, %s939_s22  }
 0x1ae PF: > { %p1104_p6 = scmp.ge.s32.totalorder %s1254_s20, 2  ;;  %s968_s8 = sand.u32 1, %s1234_s15  }
 0x1af   : > { %s969_s9 = scalar_lea.sflag [#allocation3], %s968_s8 }
 0x1b0   : > { %p1100_p7 = pnand %p1104_p6, %p1337_p8 }
 0x1b2   : > { %p1101_p9 = pneg %p1100_p7 }
 0x1b4   : > { %1229 = dma.done.wait (%p1101_p9), %s969_s9, 192  }
 0x1b5   : > { %1231 = vsyncadd (%p1101_p9), %s969_s9, 4294967104  ;;  %s17_s20 = sadd.s32 1, %s1254_s20   ;;  %s1514_s15 = smov %s1238_s16 }
 0x1b6   : > { %p14_p10 = scmp.ge.s32.totalorder %s17_s20, 4   ;;  %s1515_s16 = smov %s1242_s17 }
 0x1b7   : > { %s1516_s17 = smov %s1343_s28  ;;  %s1517_s18 = smov %s1250_s19 }
 0x1b8   : > { %s1518_s19 = smov %s1520_s23  ;;  %16 = sbr.rel (!%p14_p10) target bundleno = 4 (0x4), region = 74 }
 0x1bd   :  { %975 = vsyncpa [#allocation3], 1 }
 0x1be   :  { %977 = vsyncpa [#allocation3 + $0x1], 1 }

</bundles_post_ra>
